<compile_context>
chip_gen: v6e
topology: v6e:2x2x1
jax: 0.10.0
libtpu: 0.0.40
codegen_flags: <defaults>
</compile_context>

<pallas_src>
import math

import jax
import jax.numpy as jnp
from jax.experimental import pallas as pl
from jax.experimental.pallas import tpu as pltpu


def _emk_kernel(x_ref, w_ref, b_ref, o_ref):
    # x_ref: (ROWS, GC)    row tile of the grouped, flattened (B*T/G, G*C) input
    # w_ref: (GC, WIDE)    block-diagonal expanded weight (VMEM resident)
    # b_ref: (1, WIDE)     group-tiled flattened bias     (VMEM resident)
    # o_ref: (ROWS, WIDE)  lane-dense output tile (WIDE % 128 == 0 when possible)
    x = x_ref[...]
    gc = x_ref.shape[1]

    # Pass 0 folds in the bias; each pass is a full-width (ROWS, WIDE)
    # multiply-add on the VPU.  w_ref[c] is zero outside its F-wide lane
    # window, so the sum of passes assembles x[r, c] * W[c, f] + b[c, f].
    acc = x[:, 0:1] * w_ref[0:1, :] + b_ref[...]
    for c in range(1, gc):
        acc = acc + x[:, c:c + 1] * w_ref[c:c + 1, :]

    o_ref[...] = acc.astype(o_ref.dtype)


def evidence_machine_kernel(x, c_weight, c_bias, *, target_tile_bytes=4 * 1024 * 1024):
    """x: (B, T, C), c_weight/c_bias: (C, F)  ->  (B, T, C, F)."""
    B, T, C = x.shape
    Cw, F = c_weight.shape
    assert Cw == C and c_bias.shape == (C, F)

    R = B * T
    CF = C * F
    dt = x.dtype
    itemsize = jnp.dtype(dt).itemsize

    # ---- row grouping G: make the output lane width a multiple of 128 so the
    # stores are unmasked and the writeback DMA is dense.  G is the minimal
    # such factor (VPU pass count scales with G*C, so keep it small). ----
    if CF % 128 == 0:
        G = 1
    else:
        G = 128 // math.gcd(CF, 128)
        if R % G != 0:
            G = 1  # fall back to the narrow layout rather than padding rows

    R2 = R // G
    GC = G * C
    WIDE = G * CF

    # ---- wrapper-side layout plumbing (tiny, done once, all contiguous) ----
    x2 = x.reshape(R2, GC)
    eye_c = jnp.eye(C, dtype=c_weight.dtype)
    # Block-diagonal expansion over channels: w_bd[c, c*F:(c+1)*F] = W[c, :].
    w_bd = (eye_c[:, :, None] * c_weight[:, None, :]).reshape(C, CF)
    if G > 1:
        # Block-diagonal expansion over the G row-groups sharing one wide row.
        w_exp = jnp.kron(jnp.eye(G, dtype=c_weight.dtype), w_bd)   # (GC, WIDE)
        b_flat = jnp.tile(c_bias.reshape(1, CF), (1, G))           # (1, WIDE)
    else:
        w_exp = w_bd
        b_flat = c_bias.reshape(1, CF)

    # ---- row tiling: multiple of 8 sublanes, a few MiB of output per tile so
    # double buffering stays well under the scoped VMEM limit on every gen. ----
    rows_target = max(8, ((target_tile_bytes // (WIDE * itemsize)) // 8) * 8)
    if R2 <= rows_target:
        rows = R2          # single full-extent block (allowed even if R2 % 8 != 0)
        grid_r = 1
    else:
        rows = rows_target  # multiple of 8; Pallas masks the partial edge block
        grid_r = pl.cdiv(R2, rows)

    out2 = pl.pallas_call(
        _emk_kernel,
        out_shape=jax.ShapeDtypeStruct((R2, WIDE), dt),
        grid_spec=pltpu.PrefetchScalarGridSpec(
            num_scalar_prefetch=0,
            grid=(grid_r,),
            in_specs=[
                pl.BlockSpec((rows, GC), lambda i: (i, 0)),    # streamed rows
                pl.BlockSpec((GC, WIDE), lambda i: (0, 0)),    # resident weights
                pl.BlockSpec((1, WIDE), lambda i: (0, 0)),     # resident bias
            ],
            out_specs=pl.BlockSpec((rows, WIDE), lambda i: (i, 0)),
        ),
        compiler_params=pltpu.CompilerParams(
            dimension_semantics=("parallel",),       # independent rows; feeds both v7x TCs
            vmem_limit_bytes=48 * 1024 * 1024,
        ),
    )(x2, w_exp, b_flat)

    # Free contiguous reshape back to the PyTorch output layout.
    return out2.reshape(B, T, C, F)


def reference(x, c_weight, c_bias):
    # Pure-JAX reference mirroring torch.einsum('btc,cf->btcf', x, W) + bias
    return jnp.einsum("btc,cf->btcf", x, c_weight) + c_bias


if __name__ == "__main__":
    # Module config: C channels, F exponent (self.F = 2 ** F)
    C = 4
    F_exp = 4
    F = 2 ** F_exp

    B, T = 2, 8

    key = jax.random.PRNGKey(0)
    kx, kw, kb = jax.random.split(key, 3)

    x = jax.random.normal(kx, (B, T, C), dtype=jnp.float32)
    c_weight = jax.random.normal(kw, (C, F), dtype=jnp.float32)
    c_bias = jax.random.normal(kb, (C, F), dtype=jnp.float32)

    emk = jax.jit(evidence_machine_kernel)
    out = emk(x, c_weight, c_bias)
    out = jax.block_until_ready(out)

    ref = reference(x, c_weight, c_bias)
    assert out.shape == (B, T, C, F)
    assert jnp.allclose(out, ref, atol=1e-5, rtol=1e-5), "mismatch vs reference"

    print("KERNEL_OK")
</pallas_src>

<mosaic_0001>
module attributes {stable_mosaic.version = 11 : i64} {
  func.func @_emk_kernel(%arg0: i32, %arg1: memref<8x8xf32, #tpu.memory_space<vmem>>, %arg2: memref<8x128xf32, #tpu.memory_space<vmem>>, %arg3: memref<1x128xf32, #tpu.memory_space<vmem>>, %arg4: memref<8x128xf32, #tpu.memory_space<vmem>>) attributes {dimension_semantics = [#tpu.dimension_semantics<parallel>], iteration_bounds = array<i64: 1>, scalar_prefetch = 0 : i64, scratch_operands = 0 : i64, tpu.core_type = #tpu.core_type<tc>, window_params = [{transform_indices = @transform_0, window_bounds = array<i64: 8, 8>}, {pipeline_mode = #tpu.pipeline_mode<synchronous>, transform_indices = @transform_1, window_bounds = array<i64: 8, 128>}, {pipeline_mode = #tpu.pipeline_mode<synchronous>, transform_indices = @transform_2, window_bounds = array<i64: 1, 128>}, {transform_indices = @transform_3, window_bounds = array<i64: 8, 128>}]} {
    %c0 = arith.constant 0 : index
    %c0_0 = arith.constant 0 : index
    %0 = vector.load %arg1[%c0, %c0_0] : memref<8x8xf32, #tpu.memory_space<vmem>>, vector<8x8xf32>
    %1 = vector.extract_strided_slice %0 {offsets = [0, 0], sizes = [8, 1], strides = [1, 1]} : vector<8x8xf32> to vector<8x1xf32>
    %c0_1 = arith.constant 0 : index
    %c0_2 = arith.constant 0 : index
    %2 = vector.load %arg2[%c0_1, %c0_2] : memref<8x128xf32, #tpu.memory_space<vmem>>, vector<1x128xf32>
    %3 = vector.broadcast %1 : vector<8x1xf32> to vector<8x128xf32>
    %4 = vector.broadcast %2 : vector<1x128xf32> to vector<8x128xf32>
    %5 = arith.mulf %3, %4 : vector<8x128xf32>
    %c0_3 = arith.constant 0 : index
    %c0_4 = arith.constant 0 : index
    %6 = vector.load %arg3[%c0_3, %c0_4] : memref<1x128xf32, #tpu.memory_space<vmem>>, vector<1x128xf32>
    %7 = vector.broadcast %6 : vector<1x128xf32> to vector<8x128xf32>
    %8 = arith.addf %5, %7 : vector<8x128xf32>
    %9 = vector.extract_strided_slice %0 {offsets = [0, 1], sizes = [8, 1], strides = [1, 1]} : vector<8x8xf32> to vector<8x1xf32>
    %c1 = arith.constant 1 : index
    %c0_5 = arith.constant 0 : index
    %10 = vector.load %arg2[%c1, %c0_5] : memref<8x128xf32, #tpu.memory_space<vmem>>, vector<1x128xf32>
    %11 = vector.broadcast %9 : vector<8x1xf32> to vector<8x128xf32>
    %12 = vector.broadcast %10 : vector<1x128xf32> to vector<8x128xf32>
    %13 = arith.mulf %11, %12 : vector<8x128xf32>
    %14 = arith.addf %8, %13 : vector<8x128xf32>
    %15 = vector.extract_strided_slice %0 {offsets = [0, 2], sizes = [8, 1], strides = [1, 1]} : vector<8x8xf32> to vector<8x1xf32>
    %c2 = arith.constant 2 : index
    %c0_6 = arith.constant 0 : index
    %16 = vector.load %arg2[%c2, %c0_6] : memref<8x128xf32, #tpu.memory_space<vmem>>, vector<1x128xf32>
    %17 = vector.broadcast %15 : vector<8x1xf32> to vector<8x128xf32>
    %18 = vector.broadcast %16 : vector<1x128xf32> to vector<8x128xf32>
    %19 = arith.mulf %17, %18 : vector<8x128xf32>
    %20 = arith.addf %14, %19 : vector<8x128xf32>
    %21 = vector.extract_strided_slice %0 {offsets = [0, 3], sizes = [8, 1], strides = [1, 1]} : vector<8x8xf32> to vector<8x1xf32>
    %c3 = arith.constant 3 : index
    %c0_7 = arith.constant 0 : index
    %22 = vector.load %arg2[%c3, %c0_7] : memref<8x128xf32, #tpu.memory_space<vmem>>, vector<1x128xf32>
    %23 = vector.broadcast %21 : vector<8x1xf32> to vector<8x128xf32>
    %24 = vector.broadcast %22 : vector<1x128xf32> to vector<8x128xf32>
    %25 = arith.mulf %23, %24 : vector<8x128xf32>
    %26 = arith.addf %20, %25 : vector<8x128xf32>
    %27 = vector.extract_strided_slice %0 {offsets = [0, 4], sizes = [8, 1], strides = [1, 1]} : vector<8x8xf32> to vector<8x1xf32>
    %c4 = arith.constant 4 : index
    %c0_8 = arith.constant 0 : index
    %28 = vector.load %arg2[%c4, %c0_8] : memref<8x128xf32, #tpu.memory_space<vmem>>, vector<1x128xf32>
    %29 = vector.broadcast %27 : vector<8x1xf32> to vector<8x128xf32>
    %30 = vector.broadcast %28 : vector<1x128xf32> to vector<8x128xf32>
    %31 = arith.mulf %29, %30 : vector<8x128xf32>
    %32 = arith.addf %26, %31 : vector<8x128xf32>
    %33 = vector.extract_strided_slice %0 {offsets = [0, 5], sizes = [8, 1], strides = [1, 1]} : vector<8x8xf32> to vector<8x1xf32>
    %c5 = arith.constant 5 : index
    %c0_9 = arith.constant 0 : index
    %34 = vector.load %arg2[%c5, %c0_9] : memref<8x128xf32, #tpu.memory_space<vmem>>, vector<1x128xf32>
    %35 = vector.broadcast %33 : vector<8x1xf32> to vector<8x128xf32>
    %36 = vector.broadcast %34 : vector<1x128xf32> to vector<8x128xf32>
    %37 = arith.mulf %35, %36 : vector<8x128xf32>
    %38 = arith.addf %32, %37 : vector<8x128xf32>
    %39 = vector.extract_strided_slice %0 {offsets = [0, 6], sizes = [8, 1], strides = [1, 1]} : vector<8x8xf32> to vector<8x1xf32>
    %c6 = arith.constant 6 : index
    %c0_10 = arith.constant 0 : index
    %40 = vector.load %arg2[%c6, %c0_10] : memref<8x128xf32, #tpu.memory_space<vmem>>, vector<1x128xf32>
    %41 = vector.broadcast %39 : vector<8x1xf32> to vector<8x128xf32>
    %42 = vector.broadcast %40 : vector<1x128xf32> to vector<8x128xf32>
    %43 = arith.mulf %41, %42 : vector<8x128xf32>
    %44 = arith.addf %38, %43 : vector<8x128xf32>
    %45 = vector.extract_strided_slice %0 {offsets = [0, 7], sizes = [8, 1], strides = [1, 1]} : vector<8x8xf32> to vector<8x1xf32>
    %c7 = arith.constant 7 : index
    %c0_11 = arith.constant 0 : index
    %46 = vector.load %arg2[%c7, %c0_11] : memref<8x128xf32, #tpu.memory_space<vmem>>, vector<1x128xf32>
    %47 = vector.broadcast %45 : vector<8x1xf32> to vector<8x128xf32>
    %48 = vector.broadcast %46 : vector<1x128xf32> to vector<8x128xf32>
    %49 = arith.mulf %47, %48 : vector<8x128xf32>
    %50 = arith.addf %44, %49 : vector<8x128xf32>
    %c0_12 = arith.constant 0 : index
    %c0_13 = arith.constant 0 : index
    %51 = vector.load %arg4[%c0_12, %c0_13] : memref<8x128xf32, #tpu.memory_space<vmem>>, vector<8x128xf32>
    tpu.vector_store %arg4[%c0_12, %c0_13], %50 {strides = array<i32>} : memref<8x128xf32, #tpu.memory_space<vmem>>, vector<8x128xf32>,
    return
  }
  func.func @transform_0(%arg0: i32) -> (i32, i32) {
    %c0_i32 = arith.constant 0 : i32
    %c0_i32_0 = arith.constant 0 : i32
    return %arg0, %c0_i32 : i32, i32
  }
  func.func @transform_1(%arg0: i32) -> (i32, i32) {
    %c0_i32 = arith.constant 0 : i32
    %c0_i32_0 = arith.constant 0 : i32
    %c0_i32_1 = arith.constant 0 : i32
    return %c0_i32, %c0_i32_0 : i32, i32
  }
  func.func @transform_2(%arg0: i32) -> (i32, i32) {
    %c0_i32 = arith.constant 0 : i32
    %c0_i32_0 = arith.constant 0 : i32
    %c0_i32_1 = arith.constant 0 : i32
    return %c0_i32, %c0_i32_0 : i32, i32
  }
  func.func @transform_3(%arg0: i32) -> (i32, i32) {
    %c0_i32 = arith.constant 0 : i32
    %c0_i32_0 = arith.constant 0 : i32
    return %arg0, %c0_i32 : i32, i32
  }
}

</mosaic_0001>

<bundles_post_ra>
// kernel: evidence_machine_kernel.1
= control target key start
LH: loop header
LB: loop body
LE: loop exit
PB: predicated region body
PF: predicated region fallthrough
CT: control target
= control target key end

     0   :  { %v142_v0 = vmov 2   ;;  %v143_v1 = vmov 0   ;;  %v144_v3 = vmov 3   ;;  %v145_v4 = vmov 1   ;;  %s203_s0 = inlined_call_operand.vmem [shape: f32[8,8], index: 0, kind: input, shape index: {}]   ;;  %s204_s1 = inlined_call_operand.vmem [shape: f32[8,128], index: 1, kind: input, shape index: {}]   ;;  %s205_s2 = inlined_call_operand.vmem [shape: f32[1,128], index: 2, kind: input, shape index: {}]   ;;  %s206_s3 = inlined_call_operand.vmem [shape: f32[8,128], index: 3, kind: output, shape index: {}]  }
   0x1   :  { %135 = vset.pattern.permute.xlu1 %v142_v0  ;;  %133 = vset.pattern.permute.xlu0 %v143_v1  ;;  %v14_v2 = vld [vmem:[%s203_s0] sm:$0xff]  ;;  %v146_v5 = vmov 4   ;;  %v147_v6 = vmov 5   ;;  %v148_v7 = vmov 6   ;;  %v149_v8 = vmov 7  }
   0x2   :  { %47 = vperm.xlu1 %135, %v14_v2   ;;  %18 = vperm.xlu0 %133, %v14_v2   ;;  %v116_v9 = vld [vmem:[%s204_s1] ss:$0 sm:$0xff]  ;;  %v118_v14 = vld [vmem:[%s204_s1 + $0x1] ss:$0 sm:$0xff]  ;;  %v119_v16 = vld [vmem:[%s204_s1 + $0x2] ss:$0 sm:$0xff] }
   0x3   :  { %v117_v12 = vld [vmem:[%s205_s2] ss:$0 sm:$0xff]  ;;  %v120_v20 = vld [vmem:[%s204_s1 + $0x3] ss:$0 sm:$0xff]  ;;  %v121_v23 = vld [vmem:[%s204_s1 + $0x4] ss:$0 sm:$0xff] }
   0x4   :  { %v122_v27 = vld [vmem:[%s204_s1 + $0x5] ss:$0 sm:$0xff]  ;;  %v123_v33 = vld [vmem:[%s204_s1 + $0x6] ss:$0 sm:$0xff]  ;;  %v124_v37 = vld [vmem:[%s204_s1 + $0x7] ss:$0 sm:$0xff] }
   0x6   :  { %136 = vset.pattern.permute.xlu1 %v144_v3  ;;  %134 = vset.pattern.permute.xlu0 %v145_v4 }
   0x7   :  { %58 = vperm.xlu1 %136, %v14_v2   ;;  %36 = vperm.xlu0 %134, %v14_v2  }
   0xb   :  { %137 = vset.pattern.permute.xlu1 %v146_v5  ;;  %138 = vset.pattern.permute.xlu0 %v147_v6 }
   0xc   :  { %69 = vperm.xlu1 %137, %v14_v2   ;;  %80 = vperm.xlu0 %138, %v14_v2  }
  0x10   :  { %139 = vset.pattern.permute.xlu1 %v148_v7  ;;  %141 = vset.pattern.permute.xlu0 %v149_v8 }
  0x11   :  { %91 = vperm.xlu1 %139, %v14_v2  }
  0x15   :  { %140 = vset.pattern.permute.xlu1 %v149_v8 }
  0x16   :  { %102 = vperm.xlu1 %140, %v14_v2  }
  0x7d   :  { %v48_v10 = vpop.permute.xlu1 %47  ;;  %v19_v11 = vpop.permute.xlu0 %18 }
  0x7e   :  { %v25_v13 = vmul.f32 %v116_v9, %v19_v11  ;;  %v54_v21 = vmul.f32 %v119_v16, %v48_v10 }
  0x80   :  { %v33_v15 = vadd.f32 %v117_v12, %v25_v13 }
  0x82   :  { %v59_v17 = vpop.permute.xlu1 %58  ;;  %v37_v18 = vpop.permute.xlu0 %36 }
  0x83   :  { %v43_v19 = vmul.f32 %v118_v14, %v37_v18  ;;  %v65_v24 = vmul.f32 %v120_v20, %v59_v17 }
  0x85   :  { %v44_v22 = vadd.f32 %v43_v19, %v33_v15 }
  0x87   :  { %v55_v25 = vadd.f32 %v54_v21, %v44_v22  ;;  %v70_v26 = vpop.permute.xlu1 %69  ;;  %v81_v28 = vpop.permute.xlu0 %80 }
  0x88   :  { %v76_v29 = vmul.f32 %v121_v23, %v70_v26  ;;  %v87_v31 = vmul.f32 %v122_v27, %v81_v28 }
  0x89   :  { %v66_v30 = vadd.f32 %v65_v24, %v55_v25 }
  0x8b   :  { %v77_v32 = vadd.f32 %v76_v29, %v66_v30 }
  0x8c   :  { %v92_v34 = vpop.permute.xlu1 %91 }
  0x8d   :  { %v88_v35 = vadd.f32 %v87_v31, %v77_v32  ;;  %v98_v36 = vmul.f32 %v123_v33, %v92_v34 }
  0x8f   :  { %v99_v39 = vadd.f32 %v98_v36, %v88_v35 }
  0x91   :  { %v103_v38 = vpop.permute.xlu1 %102 }
  0x92   :  { %v109_v40 = vmul.f32 %v124_v37, %v103_v38 }
  0x94   :  { %v110_v41 = vadd.f32 %v109_v40, %v99_v39 }
  0x96   :  { %111 = vst [vmem:[%s206_s3] sm:$0xff] %v110_v41 }

</bundles_post_ra>
